<compile_context>
chip_gen: v7x
topology: tpu7x:2x2x1
jax: 0.10.0
libtpu: 0.0.40
codegen_flags: <defaults>
</compile_context>

<pallas_src>
import functools

import jax
import jax.numpy as jnp
import numpy as np
from jax.experimental import pallas as pl
from jax.experimental.pallas import tpu as pltpu


# ---------------------------------------------------------------------------
# Kernel 1: preference embedding + 3-layer MLP -> rep (num_chunks, hidden).
# A few KB total; runs once.  Emits rep in the dtype kernel 2 consumes.
# ---------------------------------------------------------------------------
def _rep_mlp_kernel(pref_ref, pemb_ref, cemb_ref,
                    w1p_ref, w1c_ref, b1_ref,
                    w2_ref, b2_ref, w3_ref, b3_ref,
                    rep_ref):
    # pref_embedding = sum_i preference[i] * pref_emb[i]  (VPU weighted sum,
    # preference scalars in SMEM; for large P switch to a broadcast multiply
    # + sublane reduce instead of the unrolled loop).
    P = pemb_ref.shape[0]
    pe = pref_ref[0] * pemb_ref[0:1, :]
    for i in range(1, P):
        pe = pe + pref_ref[i] * pemb_ref[i:i + 1, :]

    # Linear 1 on concat(pref_embedding, chunk_embedding), split to avoid an
    # in-kernel concatenate:  x @ W1 = pe @ W1[:Ep] + chunk @ W1[Ep:]
    h = (jnp.dot(pe, w1p_ref[...], preferred_element_type=jnp.float32)
         + jnp.dot(cemb_ref[...], w1c_ref[...],
                   preferred_element_type=jnp.float32)
         + b1_ref[...])
    h = jnp.maximum(h, 0.0)

    # Linear 2 + ReLU
    h = jnp.dot(h, w2_ref[...], preferred_element_type=jnp.float32) + b2_ref[...]
    h = jnp.maximum(h, 0.0)

    # Linear 3 (no activation)
    rep = jnp.dot(h, w3_ref[...], preferred_element_type=jnp.float32) + b3_ref[...]
    rep_ref[...] = rep.astype(rep_ref.dtype)


def _compute_rep(preference, params, rep_dtype):
    pemb = params["pref_emb"]          # (P, Ep)
    cemb = params["chunk_emb"]         # (C, Ec)
    w1p, w1c, b1 = params["w1p"], params["w1c"], params["b1"]
    w2, b2, w3, b3 = params["w2"], params["b2"], params["w3"], params["b3"]
    C = cemb.shape[0]
    H = w1c.shape[1]

    smem = pl.BlockSpec(memory_space=pltpu.MemorySpace.SMEM)

    def full(shape):
        return pl.BlockSpec(shape, lambda j: (0,) * len(shape))

    return pl.pallas_call(
        _rep_mlp_kernel,
        out_shape=jax.ShapeDtypeStruct((C, H), rep_dtype),
        grid=(1,),
        in_specs=[smem,
                  full(pemb.shape), full(cemb.shape),
                  full(w1p.shape), full(w1c.shape), full(b1.shape),
                  full(w2.shape), full(b2.shape),
                  full(w3.shape), full(b3.shape)],
        out_specs=pl.BlockSpec((C, H), lambda j: (0, 0)),
    )(preference, pemb, cemb, w1p, w1c, b1, w2, b2, w3, b3)


# ---------------------------------------------------------------------------
# Kernel 2: rep @ W_all^T, streamed over lane tiles of the weight table.
# ---------------------------------------------------------------------------
def _hyper_matmul_kernel(rep_ref, wT_ref, out_ref):
    # rep is resident (constant block index); wT / out tiles stream.
    out_ref[...] = jnp.dot(rep_ref[...], wT_ref[...],
                           preferred_element_type=jnp.float32).astype(out_ref.dtype)


def _hyper_matmul_dequant_kernel(rep_ref, wT_ref, scale_ref, out_ref):
    # Narrow (int8 / fp8) weight tile streamed from HBM, upcast on the VPU
    # (hidden under the DMA), f32 MXU pass, per-column scale on the output.
    w = wT_ref[...].astype(jnp.float32)
    acc = jnp.dot(rep_ref[...], w, preferred_element_type=jnp.float32)
    out_ref[...] = (acc * scale_ref[...]).astype(out_ref.dtype)


_VMEM_DATA_BUDGET = 32 * 1024 * 1024   # data working-set budget; fits v7x 64 MiB
_MAX_TILE_N = 32768                    # amortizes the ~0.35 us/step overhead


def _pick_tile_n(N, H, C, *, wT_itemsize, out_itemsize, scale_itemsize,
                 data_budget_bytes, max_tile):
    """Largest 128-multiple divisor of N whose double-buffered working set
    (wT tile + out tile + optional scale) fits the VMEM data budget."""
    per_lane = 2 * (H * wT_itemsize + C * out_itemsize + scale_itemsize)
    resident = 2 * C * H * 4            # rep double-buffered (conservative f32)
    avail = max(data_budget_bytes - resident, 128 * per_lane)
    cap = min(max_tile, (avail // per_lane) // 128 * 128, N)
    cap = max(cap, 128)
    best = 128
    t = 128
    while t <= cap:
        if N % t == 0:
            best = t
        t += 128
    return best


def _hyper_matmul(rep, w_all_T, scale, out_dtype):
    C, H = rep.shape
    N = w_all_T.shape[1]
    assert N % 128 == 0, "num_ws * w_dim must be 128-aligned for lane-dense stores"

    tile_n = _pick_tile_n(
        N, H, C,
        wT_itemsize=w_all_T.dtype.itemsize,
        out_itemsize=np.dtype(out_dtype).itemsize,
        scale_itemsize=(4 if scale is not None else 0),
        data_budget_bytes=_VMEM_DATA_BUDGET,
        max_tile=_MAX_TILE_N)
    grid = (N // tile_n,)

    rep_spec = pl.BlockSpec((C, H), lambda j: (0, 0))        # resident
    wT_spec = pl.BlockSpec((H, tile_n), lambda j: (0, j))    # streamed
    out_spec = pl.BlockSpec((C, tile_n), lambda j: (0, j))   # streamed, lane-dense
    compiler_params = pltpu.CompilerParams(
        # No cross-step state -> lane tiles can shard across v7x's 2 TCs.
        dimension_semantics=("parallel",),
        # Scoped-VMEM defaults (16 MiB v5e / 32 MiB v6e,v7x) are below the
        # derived working set for large tiles; raise explicitly.
        vmem_limit_bytes=_VMEM_DATA_BUDGET + (8 << 20))

    if scale is None:
        return pl.pallas_call(
            _hyper_matmul_kernel,
            out_shape=jax.ShapeDtypeStruct((C, N), out_dtype),
            grid=grid,
            in_specs=[rep_spec, wT_spec],
            out_specs=out_spec,
            compiler_params=compiler_params,
        )(rep, w_all_T)

    scale_spec = pl.BlockSpec((1, tile_n), lambda j: (0, j))
    return pl.pallas_call(
        _hyper_matmul_dequant_kernel,
        out_shape=jax.ShapeDtypeStruct((C, N), out_dtype),
        grid=grid,
        in_specs=[rep_spec, wT_spec, scale_spec],
        out_specs=out_spec,
        compiler_params=compiler_params,
    )(rep, w_all_T, scale)


def hyper_segnet_mlp_forward(preference, params, *, out_dtype=jnp.float32):
    """Full forward: returns the flat weight_vector (num_chunks*num_ws*w_dim,).

    # TODO(synk): for workloads evaluating many preference vectors, batch B
    # preferences in one call (rep -> (B*C, H), out -> (B*C, N)) to raise the
    # arithmetic intensity of the HBM-bound main matmul.
    """
    w_all_T = params["w_all_T"]
    scale = params.get("w_all_scale", None)

    if scale is not None or jnp.issubdtype(w_all_T.dtype, jnp.integer):
        rep_dtype = jnp.float32           # dequant path: f32 MXU pass
    else:
        rep_dtype = w_all_T.dtype         # f32 or bf16 MXU pass, no per-step cast

    rep = _compute_rep(preference, params, rep_dtype)
    out = _hyper_matmul(rep, w_all_T, scale, out_dtype)
    # Row-major flatten == torch: for each chunk, cat over ws, then cat chunks.
    return out.reshape(-1)


# ---------------------------------------------------------------------------
# Parameter construction (deterministic, synthetic), quantization helper,
# reference, and dict-slicing glue.
# ---------------------------------------------------------------------------
def make_params(key, *, pref_dim, pref_emb_dim, chunk_emb_dim, hidden_dim,
                num_chunks, num_ws, w_dim):
    ks = jax.random.split(key, 12)
    in_dim = pref_emb_dim + chunk_emb_dim
    p = {}
    p["pref_emb"] = 0.1 * jax.random.normal(ks[0], (pref_dim, pref_emb_dim), jnp.float32)
    p["chunk_emb"] = 0.1 * jax.random.normal(ks[1], (num_chunks, chunk_emb_dim), jnp.float32)
    w1 = 0.1 * jax.random.normal(ks[2], (in_dim, hidden_dim), jnp.float32)
    p["w1p"], p["w1c"] = w1[:pref_emb_dim], w1[pref_emb_dim:]
    p["b1"] = 0.1 * jax.random.normal(ks[3], (1, hidden_dim), jnp.float32)
    p["w2"] = 0.1 * jax.random.normal(ks[4], (hidden_dim, hidden_dim), jnp.float32)
    p["b2"] = 0.1 * jax.random.normal(ks[5], (1, hidden_dim), jnp.float32)
    p["w3"] = 0.1 * jax.random.normal(ks[6], (hidden_dim, hidden_dim), jnp.float32)
    p["b3"] = 0.1 * jax.random.normal(ks[7], (1, hidden_dim), jnp.float32)
    # ws: list of (w_dim, hidden) matrices, stacked as in torch then transposed.
    ws = 0.1 * jax.random.normal(ks[8], (num_ws, w_dim, hidden_dim), jnp.float32)
    p["w_all_T"] = ws.reshape(num_ws * w_dim, hidden_dim).T  # (H, num_ws*w_dim)
    p["_w1_full"] = w1
    p["_ws"] = ws
    return p


def quantize_per_column_int8(w):
    """Per-output-column symmetric int8 quantization of w_all_T (H, N)."""
    amax = jnp.max(jnp.abs(w), axis=0, keepdims=True)         # (1, N)
    scale = jnp.maximum(amax, 1e-12) / 127.0
    wq = jnp.clip(jnp.round(w / scale), -127, 127).astype(jnp.int8)
    return wq, scale.astype(jnp.float32)


def reference_forward(preference, p, *, num_chunks, num_ws, w_dim):
    pe = preference @ p["pref_emb"]                               # (Ep,)
    x = jnp.concatenate(
        [jnp.broadcast_to(pe, (num_chunks, pe.shape[0])), p["chunk_emb"]], axis=1)
    h = jax.nn.relu(x @ p["_w1_full"] + p["b1"])
    h = jax.nn.relu(h @ p["w2"] + p["b2"])
    rep = h @ p["w3"] + p["b3"]
    w_all = p["_ws"].reshape(num_ws * w_dim, -1)                  # (num_ws*w_dim, H)
    return (rep @ w_all.T).reshape(-1)


def slice_into_layers(weight_vector, layer_to_shape):
    out, pos = {}, 0
    for name, shape in layer_to_shape.items():
        n = 1
        for s in shape:
            n *= s
        out[name] = weight_vector[pos:pos + n].reshape(shape)
        pos += n
    return out


if __name__ == "__main__":
    # Small, module-consistent shapes.
    PREF_DIM = 3
    PREF_EMB = 32
    CHUNK_EMB = 64
    HIDDEN = 32
    NUM_CHUNKS = 8
    NUM_WS = 4
    W_DIM = 128

    key = jax.random.PRNGKey(0)
    k_pref, k_par = jax.random.split(key)
    preference = jax.nn.softmax(jax.random.normal(k_pref, (PREF_DIM,), jnp.float32))
    params = make_params(k_par, pref_dim=PREF_DIM, pref_emb_dim=PREF_EMB,
                         chunk_emb_dim=CHUNK_EMB, hidden_dim=HIDDEN,
                         num_chunks=NUM_CHUNKS, num_ws=NUM_WS, w_dim=W_DIM)

    ref = reference_forward(preference, params, num_chunks=NUM_CHUNKS,
                            num_ws=NUM_WS, w_dim=W_DIM)

    # --- f32 path (exact module semantics) --------------------------------
    fwd_f32 = jax.jit(functools.partial(hyper_segnet_mlp_forward,
                                        out_dtype=jnp.float32))
    weight_vector = jax.block_until_ready(fwd_f32(preference, params))
    assert weight_vector.shape == (NUM_CHUNKS * NUM_WS * W_DIM,)
    assert jnp.allclose(weight_vector, ref, atol=1e-4, rtol=1e-4)

    # --- bf16 weight table + bf16 output (bandwidth-saving config) ---------
    fwd_bf16 = jax.jit(functools.partial(hyper_segnet_mlp_forward,
                                         out_dtype=jnp.bfloat16))
    params_bf16 = dict(params)
    params_bf16["w_all_T"] = params["w_all_T"].astype(jnp.bfloat16)
    wv_bf16 = jax.block_until_ready(fwd_bf16(preference, params_bf16))
    assert jnp.allclose(wv_bf16.astype(jnp.float32), ref, atol=1e-2, rtol=5e-2)

    # --- int8 weight table + per-column f32 scale (v5e/v6e lever; an fp8
    # --- table on v7x drops into the same dequant kernel) ------------------
    wq, wscale = quantize_per_column_int8(params["w_all_T"])
    params_int8 = dict(params)
    params_int8["w_all_T"] = wq
    params_int8["w_all_scale"] = wscale
    wv_int8 = jax.block_until_ready(fwd_bf16(preference, params_int8))
    rel = (jnp.linalg.norm(wv_int8.astype(jnp.float32) - ref)
           / jnp.linalg.norm(ref))
    assert float(rel) < 5e-2

    # --- slice into a (downscaled) layer dict, same mechanism that feeds
    # --- SegnetTarget.forward(x, weights) ----------------------------------
    layer_to_shape = {
        "segnet.encoder_block.0.conv2d.weight": (4, 3, 3, 3),
        "segnet.encoder_block.0.bn1.weight": (4,),
        "segnet.encoder_block.0.bn1.bias": (4,),
        "segnet.decoder_block.0.conv2d.weight": (4, 4, 3, 3),
        "segnet.decoder_block.0.bn1.weight": (4,),
        "segnet.decoder_block.0.bn1.bias": (4,),
        "segnet.pred_task1.conv2d2.weight": (13, 4, 1, 1),
        "segnet.pred_task2.conv2d2.weight": (1, 4, 1, 1),
    }
    out_dict = slice_into_layers(weight_vector, layer_to_shape)
    jax.block_until_ready(out_dict)
    for name, shape in layer_to_shape.items():
        assert out_dict[name].shape == shape

    print("KERNEL_OK")
</pallas_src>

<mosaic_0001>
module attributes {stable_mosaic.version = 11 : i64} {
  func.func @_rep_mlp_kernel(%arg0: i32, %arg1: memref<3xf32, #tpu.memory_space<smem>>, %arg2: memref<3x32xf32, #tpu.memory_space<vmem>>, %arg3: memref<8x64xf32, #tpu.memory_space<vmem>>, %arg4: memref<32x32xf32, #tpu.memory_space<vmem>>, %arg5: memref<64x32xf32, #tpu.memory_space<vmem>>, %arg6: memref<1x32xf32, #tpu.memory_space<vmem>>, %arg7: memref<32x32xf32, #tpu.memory_space<vmem>>, %arg8: memref<1x32xf32, #tpu.memory_space<vmem>>, %arg9: memref<32x32xf32, #tpu.memory_space<vmem>>, %arg10: memref<1x32xf32, #tpu.memory_space<vmem>>, %arg11: memref<8x32xf32, #tpu.memory_space<vmem>>) attributes {dimension_semantics = [#tpu.dimension_semantics<arbitrary>], iteration_bounds = array<i64: 1>, scalar_prefetch = 0 : i64, scratch_operands = 0 : i64, tpu.core_type = #tpu.core_type<tc>, window_params = [{transform_indices = @transform_0, window_bounds = array<i64: 3>}, {pipeline_mode = #tpu.pipeline_mode<synchronous>, transform_indices = @transform_1, window_bounds = array<i64: 3, 32>}, {pipeline_mode = #tpu.pipeline_mode<synchronous>, transform_indices = @transform_2, window_bounds = array<i64: 8, 64>}, {pipeline_mode = #tpu.pipeline_mode<synchronous>, transform_indices = @transform_3, window_bounds = array<i64: 32, 32>}, {pipeline_mode = #tpu.pipeline_mode<synchronous>, transform_indices = @transform_4, window_bounds = array<i64: 64, 32>}, {pipeline_mode = #tpu.pipeline_mode<synchronous>, transform_indices = @transform_5, window_bounds = array<i64: 1, 32>}, {pipeline_mode = #tpu.pipeline_mode<synchronous>, transform_indices = @transform_6, window_bounds = array<i64: 32, 32>}, {pipeline_mode = #tpu.pipeline_mode<synchronous>, transform_indices = @transform_7, window_bounds = array<i64: 1, 32>}, {pipeline_mode = #tpu.pipeline_mode<synchronous>, transform_indices = @transform_8, window_bounds = array<i64: 32, 32>}, {pipeline_mode = #tpu.pipeline_mode<synchronous>, transform_indices = @transform_9, window_bounds = array<i64: 1, 32>}, {pipeline_mode = #tpu.pipeline_mode<synchronous>, transform_indices = @transform_10, window_bounds = array<i64: 8, 32>}]} {
    %c0 = arith.constant 0 : index
    %0 = memref.load %arg1[%c0] : memref<3xf32, #tpu.memory_space<smem>>
    %c0_0 = arith.constant 0 : index
    %c0_1 = arith.constant 0 : index
    %1 = vector.load %arg2[%c0_0, %c0_1] : memref<3x32xf32, #tpu.memory_space<vmem>>, vector<1x32xf32>
    %2 = vector.broadcast %0 : f32 to vector<1x32xf32>
    %3 = arith.mulf %2, %1 : vector<1x32xf32>
    %c1 = arith.constant 1 : index
    %4 = memref.load %arg1[%c1] : memref<3xf32, #tpu.memory_space<smem>>
    %c1_2 = arith.constant 1 : index
    %c0_3 = arith.constant 0 : index
    %5 = vector.load %arg2[%c1_2, %c0_3] : memref<3x32xf32, #tpu.memory_space<vmem>>, vector<1x32xf32>
    %6 = vector.broadcast %4 : f32 to vector<1x32xf32>
    %7 = arith.mulf %6, %5 : vector<1x32xf32>
    %8 = arith.addf %3, %7 : vector<1x32xf32>
    %c2 = arith.constant 2 : index
    %9 = memref.load %arg1[%c2] : memref<3xf32, #tpu.memory_space<smem>>
    %c2_4 = arith.constant 2 : index
    %c0_5 = arith.constant 0 : index
    %10 = vector.load %arg2[%c2_4, %c0_5] : memref<3x32xf32, #tpu.memory_space<vmem>>, vector<1x32xf32>
    %11 = vector.broadcast %9 : f32 to vector<1x32xf32>
    %12 = arith.mulf %11, %10 : vector<1x32xf32>
    %13 = arith.addf %8, %12 : vector<1x32xf32>
    %c0_6 = arith.constant 0 : index
    %c0_7 = arith.constant 0 : index
    %14 = vector.load %arg4[%c0_6, %c0_7] : memref<32x32xf32, #tpu.memory_space<vmem>>, vector<32x32xf32>
    %cst = arith.constant dense<0.000000e+00> : vector<1x32xf32>
    %15 = tpu.matmul %13, %14, %cst {dimension_numbers = #tpu.dot_dimension_numbers<[1], [0], [0], [1], [0, 0, 1, 1], [], []>} : vector<1x32xf32>, vector<32x32xf32>, vector<1x32xf32> -> vector<1x32xf32>
    %c0_8 = arith.constant 0 : index
    %c0_9 = arith.constant 0 : index
    %16 = vector.load %arg3[%c0_8, %c0_9] : memref<8x64xf32, #tpu.memory_space<vmem>>, vector<8x64xf32>
    %c0_10 = arith.constant 0 : index
    %c0_11 = arith.constant 0 : index
    %17 = vector.load %arg5[%c0_10, %c0_11] : memref<64x32xf32, #tpu.memory_space<vmem>>, vector<64x32xf32>
    %cst_12 = arith.constant dense<0.000000e+00> : vector<8x32xf32>
    %18 = tpu.matmul %16, %17, %cst_12 {dimension_numbers = #tpu.dot_dimension_numbers<[1], [0], [0], [1], [0, 0, 1, 1], [], []>} : vector<8x64xf32>, vector<64x32xf32>, vector<8x32xf32> -> vector<8x32xf32>
    %19 = vector.broadcast %15 : vector<1x32xf32> to vector<8x32xf32>
    %20 = arith.addf %19, %18 : vector<8x32xf32>
    %c0_13 = arith.constant 0 : index
    %c0_14 = arith.constant 0 : index
    %21 = vector.load %arg6[%c0_13, %c0_14] : memref<1x32xf32, #tpu.memory_space<vmem>>, vector<1x32xf32>
    %22 = vector.broadcast %21 : vector<1x32xf32> to vector<8x32xf32>
    %23 = arith.addf %20, %22 : vector<8x32xf32>
    %cst_15 = arith.constant 0.000000e+00 : f32
    %24 = vector.broadcast %cst_15 : f32 to vector<8x32xf32>
    %25 = arith.maximumf %23, %24 : vector<8x32xf32>
    %c0_16 = arith.constant 0 : index
    %c0_17 = arith.constant 0 : index
    %26 = vector.load %arg7[%c0_16, %c0_17] : memref<32x32xf32, #tpu.memory_space<vmem>>, vector<32x32xf32>
    %cst_18 = arith.constant dense<0.000000e+00> : vector<8x32xf32>
    %27 = tpu.matmul %25, %26, %cst_18 {dimension_numbers = #tpu.dot_dimension_numbers<[1], [0], [0], [1], [0, 0, 1, 1], [], []>} : vector<8x32xf32>, vector<32x32xf32>, vector<8x32xf32> -> vector<8x32xf32>
    %c0_19 = arith.constant 0 : index
    %c0_20 = arith.constant 0 : index
    %28 = vector.load %arg8[%c0_19, %c0_20] : memref<1x32xf32, #tpu.memory_space<vmem>>, vector<1x32xf32>
    %29 = vector.broadcast %28 : vector<1x32xf32> to vector<8x32xf32>
    %30 = arith.addf %27, %29 : vector<8x32xf32>
    %cst_21 = arith.constant 0.000000e+00 : f32
    %31 = vector.broadcast %cst_21 : f32 to vector<8x32xf32>
    %32 = arith.maximumf %30, %31 : vector<8x32xf32>
    %c0_22 = arith.constant 0 : index
    %c0_23 = arith.constant 0 : index
    %33 = vector.load %arg9[%c0_22, %c0_23] : memref<32x32xf32, #tpu.memory_space<vmem>>, vector<32x32xf32>
    %cst_24 = arith.constant dense<0.000000e+00> : vector<8x32xf32>
    %34 = tpu.matmul %32, %33, %cst_24 {dimension_numbers = #tpu.dot_dimension_numbers<[1], [0], [0], [1], [0, 0, 1, 1], [], []>} : vector<8x32xf32>, vector<32x32xf32>, vector<8x32xf32> -> vector<8x32xf32>
    %c0_25 = arith.constant 0 : index
    %c0_26 = arith.constant 0 : index
    %35 = vector.load %arg10[%c0_25, %c0_26] : memref<1x32xf32, #tpu.memory_space<vmem>>, vector<1x32xf32>
    %36 = vector.broadcast %35 : vector<1x32xf32> to vector<8x32xf32>
    %37 = arith.addf %34, %36 : vector<8x32xf32>
    %c0_27 = arith.constant 0 : index
    %c0_28 = arith.constant 0 : index
    %38 = vector.load %arg11[%c0_27, %c0_28] : memref<8x32xf32, #tpu.memory_space<vmem>>, vector<8x32xf32>
    tpu.vector_store %arg11[%c0_27, %c0_28], %37 {strides = array<i32>} : memref<8x32xf32, #tpu.memory_space<vmem>>, vector<8x32xf32>,
    return
  }
  func.func @transform_0(%arg0: i32) -> i32 {
    %c0_i32 = arith.constant 0 : i32
    %c0_i32_0 = arith.constant 0 : i32
    return %c0_i32 : i32
  }
  func.func @transform_1(%arg0: i32) -> (i32, i32) {
    %c0_i32 = arith.constant 0 : i32
    %c0_i32_0 = arith.constant 0 : i32
    %c0_i32_1 = arith.constant 0 : i32
    return %c0_i32, %c0_i32_0 : i32, i32
  }
  func.func @transform_2(%arg0: i32) -> (i32, i32) {
    %c0_i32 = arith.constant 0 : i32
    %c0_i32_0 = arith.constant 0 : i32
    %c0_i32_1 = arith.constant 0 : i32
    return %c0_i32, %c0_i32_0 : i32, i32
  }
  func.func @transform_3(%arg0: i32) -> (i32, i32) {
    %c0_i32 = arith.constant 0 : i32
    %c0_i32_0 = arith.constant 0 : i32
    %c0_i32_1 = arith.constant 0 : i32
    return %c0_i32, %c0_i32_0 : i32, i32
  }
  func.func @transform_4(%arg0: i32) -> (i32, i32) {
    %c0_i32 = arith.constant 0 : i32
    %c0_i32_0 = arith.constant 0 : i32
    %c0_i32_1 = arith.constant 0 : i32
    return %c0_i32, %c0_i32_0 : i32, i32
  }
  func.func @transform_5(%arg0: i32) -> (i32, i32) {
    %c0_i32 = arith.constant 0 : i32
    %c0_i32_0 = arith.constant 0 : i32
    %c0_i32_1 = arith.constant 0 : i32
    return %c0_i32, %c0_i32_0 : i32, i32
  }
  func.func @transform_6(%arg0: i32) -> (i32, i32) {
    %c0_i32 = arith.constant 0 : i32
    %c0_i32_0 = arith.constant 0 : i32
    %c0_i32_1 = arith.constant 0 : i32
    return %c0_i32, %c0_i32_0 : i32, i32
  }
  func.func @transform_7(%arg0: i32) -> (i32, i32) {
    %c0_i32 = arith.constant 0 : i32
    %c0_i32_0 = arith.constant 0 : i32
    %c0_i32_1 = arith.constant 0 : i32
    return %c0_i32, %c0_i32_0 : i32, i32
  }
  func.func @transform_8(%arg0: i32) -> (i32, i32) {
    %c0_i32 = arith.constant 0 : i32
    %c0_i32_0 = arith.constant 0 : i32
    %c0_i32_1 = arith.constant 0 : i32
    return %c0_i32, %c0_i32_0 : i32, i32
  }
  func.func @transform_9(%arg0: i32) -> (i32, i32) {
    %c0_i32 = arith.constant 0 : i32
    %c0_i32_0 = arith.constant 0 : i32
    %c0_i32_1 = arith.constant 0 : i32
    return %c0_i32, %c0_i32_0 : i32, i32
  }
  func.func @transform_10(%arg0: i32) -> (i32, i32) {
    %c0_i32 = arith.constant 0 : i32
    %c0_i32_0 = arith.constant 0 : i32
    %c0_i32_1 = arith.constant 0 : i32
    return %c0_i32, %c0_i32_0 : i32, i32
  }
}

module attributes {stable_mosaic.version = 11 : i64} {
  func.func @_hyper_matmul_kernel(%arg0: i32, %arg1: memref<8x32xf32, #tpu.memory_space<vmem>>, %arg2: memref<32x512xf32, #tpu.memory_space<vmem>>, %arg3: memref<8x512xf32, #tpu.memory_space<vmem>>) attributes {dimension_semantics = [#tpu.dimension_semantics<parallel>], iteration_bounds = array<i64: 1>, scalar_prefetch = 0 : i64, scratch_operands = 0 : i64, tpu.core_type = #tpu.core_type<tc>, window_params = [{pipeline_mode = #tpu.pipeline_mode<synchronous>, transform_indices = @transform_0, window_bounds = array<i64: 8, 32>}, {transform_indices = @transform_1, window_bounds = array<i64: 32, 512>}, {transform_indices = @transform_2, window_bounds = array<i64: 8, 512>}]} {
    %c0 = arith.constant 0 : index
    %c0_0 = arith.constant 0 : index
    %0 = vector.load %arg1[%c0, %c0_0] : memref<8x32xf32, #tpu.memory_space<vmem>>, vector<8x32xf32>
    %c0_1 = arith.constant 0 : index
    %c0_2 = arith.constant 0 : index
    %1 = vector.load %arg2[%c0_1, %c0_2] : memref<32x512xf32, #tpu.memory_space<vmem>>, vector<32x512xf32>
    %cst = arith.constant dense<0.000000e+00> : vector<8x512xf32>
    %2 = tpu.matmul %0, %1, %cst {dimension_numbers = #tpu.dot_dimension_numbers<[1], [0], [0], [1], [0, 0, 1, 1], [], []>} : vector<8x32xf32>, vector<32x512xf32>, vector<8x512xf32> -> vector<8x512xf32>
    %c0_3 = arith.constant 0 : index
    %c0_4 = arith.constant 0 : index
    %3 = vector.load %arg3[%c0_3, %c0_4] : memref<8x512xf32, #tpu.memory_space<vmem>>, vector<8x512xf32>
    tpu.vector_store %arg3[%c0_3, %c0_4], %2 {strides = array<i32>} : memref<8x512xf32, #tpu.memory_space<vmem>>, vector<8x512xf32>,
    return
  }
  func.func @transform_0(%arg0: i32) -> (i32, i32) {
    %c0_i32 = arith.constant 0 : i32
    %c0_i32_0 = arith.constant 0 : i32
    %c0_i32_1 = arith.constant 0 : i32
    return %c0_i32, %c0_i32_0 : i32, i32
  }
  func.func @transform_1(%arg0: i32) -> (i32, i32) {
    %c0_i32 = arith.constant 0 : i32
    %c0_i32_0 = arith.constant 0 : i32
    return %c0_i32, %arg0 : i32, i32
  }
  func.func @transform_2(%arg0: i32) -> (i32, i32) {
    %c0_i32 = arith.constant 0 : i32
    %c0_i32_0 = arith.constant 0 : i32
    return %c0_i32, %arg0 : i32, i32
  }
}

</mosaic_0001>

<bundles_post_ra>
// kernel: hyper_segnet_mlp_forward.3
= control target key start
LH: loop header
LB: loop body
LE: loop exit
PB: predicated region body
PF: predicated region fallthrough
CT: control target
= control target key end

     0   :  { %v201_v3 = vmov 0.0   ;;  %vm28_vm0 = vcmask 261120   ;;  %s280_s1 = inlined_call_operand.vmem [shape: f32[32,512], index: 1, kind: input, shape index: {}]   ;;  %s281_s0 = inlined_call_operand.vmem [shape: f32[8,32], index: 0, kind: input, shape index: {}]   ;;  %s282_s2 = inlined_call_operand.vmem [shape: f32[8,512], index: 2, kind: output, shape index: {}]  }
   0x1   :  { %v13_v0 = vld [vmem:[%s280_s1 + $0x8] sm:$0xff]  ;;  %v15_v2 = vld [vmem:[%s280_s1 + $0x18] sm:$0xff]  ;;  %96 = vmatprep.mubr.f32.mxu0 %v201_v3  ;;  %167 = vmatprep.mubr.f32.mxu1 %v201_v3  ;;  %v12_v6 = vld [vmem:[%s280_s1] sm:$0xff] }
   0x2   :  { %v17_v1 = vld [vmem:[%s280_s1 + $0x28] sm:$0xff]  ;;  %v19_v5 = vld [vmem:[%s280_s1 + $0x38] sm:$0xff]  ;;  %v16_v7 = vld [vmem:[%s280_s1 + $0x20] sm:$0xff] }
   0x3   :  { %v184_v4 = vpack.c.bf16 %v17_v1, %v13_v0  ;;  %v192_v8 = vpack.c.bf16 %v19_v5, %v15_v2  ;;  %v186_v9 = vpack.c.bf16 %v16_v7, %v12_v6  ;;  %v14_v10 = vld [vmem:[%s280_s1 + $0x10] sm:$0xff]  ;;  %v21_v12 = vld [vmem:[%s280_s1 + $0x48] sm:$0xff]  ;;  %v23_v15 = vld [vmem:[%s280_s1 + $0x58] sm:$0xff] }
   0x4   :  { %v18_v11 = vld [vmem:[%s280_s1 + $0x30] sm:$0xff]  ;;  %v25_v14 = vld [vmem:[%s280_s1 + $0x68] sm:$0xff]  ;;  %v27_v16 = vld [vmem:[%s280_s1 + $0x78] sm:$0xff] }
   0x5   :  { %185 = vmatprep.subr.bf16.mxu0 %v184_v4  ;;  %v194_v13 = vpack.c.bf16 %v18_v11, %v14_v10  ;;  %193 = vmatprep.subr.bf16.mxu1 %v192_v8  ;;  %v188_v17 = vpack.c.bf16 %v25_v14, %v21_v12  ;;  %v196_v18 = vpack.c.bf16 %v27_v16, %v23_v15  ;;  %v20_v19 = vld [vmem:[%s280_s1 + $0x40] sm:$0xff]  ;;  %v22_v21 = vld [vmem:[%s280_s1 + $0x50] sm:$0xff] }
   0x6   :  { %187 = vmatpush1.bf16.msra.mxu0 %v186_v9  ;;  %v24_v20 = vld [vmem:[%s280_s1 + $0x60] sm:$0xff]  ;;  %v26_v23 = vld [vmem:[%s280_s1 + $0x70] sm:$0xff] }
   0x7   :  { %195 = vmatpush1.bf16.msra.mxu1 %v194_v13  ;;  %v190_v22 = vpack.c.bf16 %v24_v20, %v20_v19  ;;  %189 = vmatprep.subr.bf16.mxu0 %v188_v17  ;;  %v198_v24 = vpack.c.bf16 %v26_v23, %v22_v21  ;;  %v11_v25 = vld [vmem:[%s281_s0] sm:$0xff] }
   0x8   :  { %197 = vmatprep.subr.bf16.mxu1 %v196_v18 }
   0xa   :  { %191 = vmatpush1.bf16.msra.mxu0 %v190_v22 }
   0xb   :  { %199 = vmatpush1.bf16.msra.mxu1 %v198_v24 }
   0xd   :  { %182 = vmatmul.mubr.msk.f32.vlgmr.msra.gmra.mrb[0].mxu0 %vm28_vm0, %v11_v25 }
   0xe   :  { %183 = vmatmul.mubr.msk.f32.vlgmr.msra.gmra.mrb[0].mxu1 %vm28_vm0, %v11_v25 }
  0xe0   :  { %v98_v26 = vpop.f32.mrb[0].mxu0 }
  0xe1   :  { %174 = vst [vmem:[%s282_s2] sm:$0xff] %v98_v26  ;;  %v169_v27 = vpop.f32.mrb[0].mxu1  ;;  %v100_v28 = vpop.f32.mrb[1].mxu0 }
  0xe2   :  { %176 = vst [vmem:[%s282_s2 + $0x10] sm:$0xff] %v169_v27  ;;  %175 = vst [vmem:[%s282_s2 + $0x8] sm:$0xff] %v100_v28  ;;  %v171_v29 = vpop.f32.mrb[1].mxu1 }
  0xe3   :  { %177 = vst [vmem:[%s282_s2 + $0x18] sm:$0xff] %v171_v29 }

// kernel: hyper_segnet_mlp_forward.2
= control target key start
LH: loop header
LB: loop body
LE: loop exit
PB: predicated region body
PF: predicated region fallthrough
CT: control target
= control target key end

     0   :  { %15 = vsyncpa [#allocation3], 0  ;;  %s718_s0 = inlined_call_operand.hbm [shape: f32[3], index: 0, kind: input, shape index: {}]   ;;  %s719_s1 = inlined_call_operand.vmem [shape: f32[3,32], index: 1, kind: input, shape index: {}]   ;;  %s720_s2 = inlined_call_operand.vmem [shape: f32[8,64], index: 2, kind: input, shape index: {}]   ;;  %s721_s3 = inlined_call_operand.vmem [shape: f32[32,32], index: 3, kind: input, shape index: {}]   ;;  %s722_s4 = inlined_call_operand.vmem [shape: f32[64,32], index: 4, kind: input, shape index: {}]   ;;  %s723_s5 = inlined_call_operand.vmem [shape: f32[1,32], index: 5, kind: input, shape index: {}]   ;;  %s724_s6 = inlined_call_operand.vmem [shape: f32[32,32], index: 6, kind: input, shape index: {}]   ;;  %s725_s7 = inlined_call_operand.vmem [shape: f32[1,32], index: 7, kind: input, shape index: {}]   ;;  %s726_s8 = inlined_call_operand.vmem [shape: f32[32,32], index: 8, kind: input, shape index: {}]   ;;  %s727_s9 = inlined_call_operand.vmem [shape: f32[1,32], index: 9, kind: input, shape index: {}]   ;;  %s728_s10 = inlined_call_operand.vmem [shape: f32[8,32], index: 10, kind: output, shape index: {}]  }
   0x1   :  { %s529_s15 = scalar_lea.hbm %s718_s0, 16 }
   0x2   :  { %p530_p0 = scmp.ne.s32.totalorder %s718_s0, %s529_s15  ;;  %p533_p1 = scmp.lt.u32.totalorder %s529_s15, %s718_s0 }
   0x4   :  { %p535_p2 = pnand %p533_p1, %p530_p0 }
   0x6   :  { %538 = shalt.err (!%p535_p2)
}
   0x7   :  { %s541_s20 = smov [#allocation2]  }
   0x8   :  { %23 = dma.hbm_to_smem %s718_s0, 16, %s541_s20, [#allocation3]  }
   0x9   :  { %539 = dma.done.wait [#allocation3], 16  }
   0xa   :  { %540 = vsyncadd [#allocation3], 4294967280 }
   0xb   :  { %45 = sfence }
   0xc   :  { %v139_v0 = vld [vmem:[%s722_s4] sm:$0xff]  ;;  %v140_v1 = vld [vmem:[%s722_s4 + $0x8] sm:$0xff]  ;;  %v141_v2 = vld [vmem:[%s722_s4 + $0x10] sm:$0xff]  ;;  %v542_v3 = vmov 0.0|0.0   ;;  %s46_s14 = sld [smem:[#allocation2]]  ;;  %vm543_vm0 = vmmov 0   ;;  %v221_v38 = vlaneseq }
   0xd   :  { %501 = vmatprep.subr.bf16.mxu1 %v542_v3  ;;  %v502_v4 = vpack.c.bf16 %v140_v1, %v139_v0  ;;  %495 = vmatprep.subr.bf16.mxu0 %v542_v3  ;;  %v142_v5 = vld [vmem:[%s722_s4 + $0x18] sm:$0xff]  ;;  %v60_v6 = vld [vmem:[%s721_s3] sm:$0xff]  ;;  %v61_v7 = vld [vmem:[%s721_s3 + $0x8] sm:$0xff]  ;;  %v544_v10 = vmov 0.0   ;;  %s410_s17 = sld [smem:[#allocation2 + $0x1]]  ;;  %s411_s24 = sld [smem:[#allocation2 + $0x2]] }
   0xe   :  { %v496_v8 = vpack.c.bf16 %v61_v7, %v60_v6  ;;  %v62_v9 = vld [vmem:[%s721_s3 + $0x10] sm:$0xff]  ;;  %451 = vmatprep.mubr.msk.f32.mxu0 %vm543_vm0, %v544_v10  ;;  %470 = vmatprep.mubr.msk.f32.mxu1 %vm543_vm0, %v544_v10  ;;  %v505_v11 = vpack.c.bf16 %v142_v5, %v141_v2  ;;  %v63_v12 = vld [vmem:[%s721_s3 + $0x18] sm:$0xff]  ;;  %v143_v13 = vld [vmem:[%s722_s4 + $0x20] sm:$0xff]  ;;  %vm64_vm1 = vcmask 261120   ;;  %vm147_vm2 = vcmask 523264  }
   0xf   :  { %503 = vmatpush3.bf16.msra.mxu1 %v502_v4  ;;  %v144_v14 = vld [vmem:[%s722_s4 + $0x28] sm:$0xff]  ;;  %v499_v15 = vpack.c.bf16 %v63_v12, %v62_v9  ;;  %v47_v16 = vld [vmem:[%s719_s1] sm:$0x1]  ;;  %v51_v17 = vld [vmem:[%s719_s1 + $0x1] sm:$0x1]  ;;  %v222_v39 = vshrl.u32 %v221_v38, 7 }
  0x10   :  { %504 = vmatprep.subr.bf16.mxu1 %v542_v3  ;;  %497 = vmatpush3.bf16.msra.mxu0 %v496_v8  ;;  %v508_v18 = vpack.c.bf16 %v144_v14, %v143_v13  ;;  %v56_v22 = vld [vmem:[%s719_s1 + $0x2] sm:$0x1]  ;;  %v145_v23 = vld [vmem:[%s722_s4 + $0x30] sm:$0xff]  ;;  %v146_v24 = vld [vmem:[%s722_s4 + $0x38] sm:$0xff] }
  0x11   :  { %498 = vmatprep.subr.bf16.mxu0 %v542_v3  ;;  %v511_v29 = vpack.c.bf16 %v146_v24, %v145_v23  ;;  %v138_v31 = vld [vmem:[%s720_s2] sm:$0xff]  ;;  %v236_v33 = vld [vmem:[%s724_s6 + $0x8] sm:$0xff]  ;;  %v237_v35 = vld [vmem:[%s724_s6 + $0x10] sm:$0xff]  ;;  %v223_v40 = vsub.s32 0, %v222_v39 }
  0x12   :  { %v48_v19 = vstv %s46_s14  ;;  %v235_v32 = vld [vmem:[%s724_s6] sm:$0xff]  ;;  %v238_v36 = vld [vmem:[%s724_s6 + $0x18] sm:$0xff]  ;;  %v321_v49 = vld [vmem:[%s726_s8 + $0x8] sm:$0xff] }
  0x13   :  { %506 = vmatpush3.bf16.msra.mxu1 %v505_v11  ;;  %v49_v20 = vmul.f32 %v48_v19, %v47_v16  ;;  %v52_v21 = vstv %s410_s17  ;;  %v57_v26 = vstv %s411_s24  ;;  %v514_v34 = vpack.c.bf16 %v236_v33, %v235_v32  ;;  %v414_v45 = vld [vmem:[%s723_s5] ss:$0 sm:$0xff]  ;;  %v322_v53 = vld [vmem:[%s726_s8 + $0x10] sm:$0xff] }
  0x14   :  { %507 = vmatprep.subr.bf16.mxu1 %v542_v3  ;;  %500 = vmatpush3.bf16.msra.mxu0 %v499_v15  ;;  %v53_v25 = vmul.f32 %v52_v21, %v51_v17  ;;  %v58_v28 = vmul.f32 %v57_v26, %v56_v22  ;;  %v517_v37 = vpack.c.bf16 %v238_v36, %v237_v35  ;;  %v320_v48 = vld [vmem:[%s726_s8] sm:$0xff]  ;;  %v323_v54 = vld [vmem:[%s726_s8 + $0x18] sm:$0xff] }
  0x15   :  { %513 = vmatprep.subr.bf16.mxu0 %v542_v3  ;;  %v520_v51 = vpack.c.bf16 %v321_v49, %v320_v48  ;;  %v523_v55 = vpack.c.bf16 %v323_v54, %v322_v53  ;;  %v415_v56 = vld [vmem:[%s725_s7] ss:$0 sm:$0xff] }
  0x16   :  { %v54_v27 = vadd.f32 %v53_v25, %v49_v20  ;;  %v417_v61 = vld [vmem:[%s727_s9] ss:$0 sm:$0xff] }
  0x17   :  { %509 = vmatpush3.bf16.msra.mxu1 %v508_v18 }
  0x18   :  { %510 = vmatprep.subr.bf16.mxu1 %v542_v3  ;;  %v59_v30 = vadd.f32 %v58_v28, %v54_v27 }
  0x1a   :  { %452 = vmatmul.mubr.msk.f32.vlgmr.msra.gmra.mrb[0].mxu0 %vm64_vm1, %v59_v30 }
  0x1b   :  { %512 = vmatpush3.bf16.msra.mxu1 %v511_v29  ;;  %481 = vmatprep.mubr.msk.f32.mxu0 %vm543_vm0, %v544_v10 }
  0x1c   :  { %515 = vmatpush3.bf16.msra.mxu0 %v514_v34 }
  0x1d   :  { %516 = vmatprep.subr.bf16.mxu0 %v542_v3 }
  0x1e   :  { %471 = vmatmul.mubr.msk.f32.vlgmr.msra.gmra.mrb[0].mxu1 %vm147_vm2, %v138_v31 }
  0x20   :  { %518 = vmatpush3.bf16.msra.mxu0 %v517_v37 }
  0x21   :  { %519 = vmatprep.subr.bf16.mxu0 %v542_v3 }
  0xed   :  { %v134_v41 = vpop.f32.mrb[0].mxu0 }
  0xee   :  { %v224_v42 = vrot.slane %v134_v41, %v223_v40  ;;  %v453_v43 = vpop.f32.mrb[1].mxu0 }
  0xf1   :  { %v217_v44 = vpop.f32.mrb[0].mxu1 }
  0xf2   :  { %v225_v46 = vadd.f32 %v224_v42, %v217_v44  ;;  %v472_v47 = vpop.f32.mrb[1].mxu1 }
  0xf4   :  { %v233_v50 = vadd.f32 %v414_v45, %v225_v46 }
  0xf6   :  { %v234_v52 = vmax.f32 %v233_v50, 0.0 }
  0xf8   :  { %482 = vmatmul.mubr.msk.f32.vlgmr.msra.gmra.mrb[2].mxu0 %vm64_vm1, %v234_v52 }
  0xf9   :  { %521 = vmatpush3.bf16.msra.mxu0 %v520_v51  ;;  %492 = vmatprep.mubr.msk.f32.mxu0 %vm543_vm0, %v544_v10 }
  0xfa   :  { %522 = vmatprep.subr.bf16.mxu0 %v542_v3 }
  0xfd   :  { %524 = vmatpush3.bf16.msra.mxu0 %v523_v55 }
 0x1cb   :  { %v315_v57 = vpop.f32.mrb[2].mxu0 }
 0x1cc   :  { %v316_v58 = vadd.f32 %v415_v56, %v315_v57  ;;  %v483_v59 = vpop.f32.mrb[3].mxu0 }
 0x1ce   :  { %v319_v60 = vmax.f32 %v316_v58, 0.0 }
 0x1d0   :  { %493 = vmatmul.mubr.msk.f32.vlgmr.msra.gmra.mrb[4].mxu0 %vm64_vm1, %v319_v60 }
 0x2a3   :  { %v400_v62 = vpop.f32.mrb[4].mxu0 }
 0x2a4   :  { %v401_v63 = vadd.f32 %v417_v61, %v400_v62  ;;  %v494_v0 = vpop.f32.mrb[5].mxu0 }
 0x2a6   :  { %404 = vst.msk [vmem:[%s728_s10] sm:$0xff] %vm64_vm1, %v401_v63 }
 0x2a7   :  { %409 = vsyncpa [#allocation3], 1 }

</bundles_post_ra>
